<compile_context>
chip_gen: v7x
topology: tpu7x:2x2x1
jax: 0.10.0
libtpu: 0.0.40
codegen_flags: <defaults>
</compile_context>

<pallas_src>
import functools

import jax
import jax.numpy as jnp
from jax.experimental import pallas as pl
from jax.experimental.pallas import tpu as pltpu

IGNORE_INDEX = -100


def _round_up(x, m):
    return ((x + m - 1) // m) * m


def _ce_partial_kernel(tile_n, blocks_per_split,
                       logits_ref, tgt_ref, out_ref, sum_acc, cnt_acc):
    s = pl.program_id(0)          # split axis (megacore "parallel")
    i = pl.program_id(1)          # batch-block reduction axis ("arbitrary")

    @pl.when(i == 0)
    def _():
        sum_acc[...] = jnp.zeros_like(sum_acc)
        cnt_acc[...] = jnp.zeros_like(cnt_acc)

    x = logits_ref[...].astype(jnp.float32)            # (tile_n, C)

    # Targets live fully resident in VMEM; slice the rows for this block.
    b = s * blocks_per_split + i                       # global batch-block index
    row0 = pl.multiple_of(b * tile_n, tile_n)
    t = tgt_ref[pl.ds(row0, tile_n), :]                # (tile_n, 1) int32

    # Numerically stable log-sum-exp over the class axis.
    m = jnp.max(x, axis=-1, keepdims=True)             # (tile_n, 1)
    lse = m + jnp.log(jnp.sum(jnp.exp(x - m), axis=-1, keepdims=True))

    # Gather the target-class logit with a one-hot compare (no dynamic gather).
    cls = jax.lax.broadcasted_iota(jnp.int32, x.shape, 1)
    tgt_logit = jnp.sum(jnp.where(cls == t, x, 0.0), axis=-1, keepdims=True)

    # Padded rows carry IGNORE_INDEX, so they are masked out here (and any
    # garbage logits in a partial last block never reach the sums).
    valid = t != IGNORE_INDEX
    per_row = jnp.where(valid, lse - tgt_logit, 0.0)   # -log p(target) or 0

    sum_acc[...] += per_row
    cnt_acc[...] += valid.astype(jnp.float32)

    @pl.when(i == blocks_per_split - 1)
    def _():
        total = jnp.sum(sum_acc[...])
        count = jnp.sum(cnt_acc[...])
        sub = jax.lax.broadcasted_iota(jnp.int32, out_ref.shape, 1)
        lane = jax.lax.broadcasted_iota(jnp.int32, out_ref.shape, 2)
        out_ref[...] = jnp.where(
            (sub == 0) & (lane == 0), total,
            jnp.where((sub == 0) & (lane == 1), count, 0.0))


def _pick_tile_n(n, c, itemsize, block_budget_bytes=4 * 1024 * 1024):
    """Largest multiple-of-8 batch tile whose logits block fits the budget."""
    t = block_budget_bytes // max(1, c * itemsize)
    t = max(8, min(1024, (t // 8) * 8))
    t = min(t, max(8, (n // 8) * 8))     # don't exceed the batch (keep mult. of 8)
    return t


def cross_entropy_loss_act(logits, targets, *, tile_n=None, num_splits=2):
    """logits: (N, C) float32/bf16; targets: (N,) int. Returns scalar float32."""
    n, c = logits.shape
    itemsize = jnp.dtype(logits.dtype).itemsize
    if tile_n is None:
        tile_n = _pick_tile_n(n, c, itemsize)
    # TODO(synk): for LLM-sized vocabularies where even a tile_n=8 logits block
    # blows the VMEM budget, add a class-axis grid split with an online
    # (flash-style) logsumexp; not needed for these class counts.

    nb = pl.cdiv(n, tile_n)                 # real batch blocks
    bps = pl.cdiv(nb, num_splits)           # blocks per split (inner grid extent)
    n_pad = num_splits * bps * tile_n       # padded batch covered by the grid

    # Pad targets with IGNORE_INDEX so padded rows are masked inside the kernel.
    tgt = jnp.full((n_pad, 1), IGNORE_INDEX, dtype=jnp.int32)
    tgt = tgt.at[:n, 0].set(targets.astype(jnp.int32))

    last_block = nb - 1
    kernel = functools.partial(_ce_partial_kernel, tile_n, bps)

    partials = pl.pallas_call(
        kernel,
        out_shape=jax.ShapeDtypeStruct((num_splits, 8, 128), jnp.float32),
        grid_spec=pltpu.PrefetchScalarGridSpec(
            num_scalar_prefetch=0,
            grid=(num_splits, bps),
            in_specs=[
                # Logits: one (tile_n, C) slab per step; clamp fully-padded
                # blocks onto the last real block (their rows are IGNORE'd).
                pl.BlockSpec(
                    (tile_n, c),
                    lambda s, i: (jnp.minimum(s * bps + i, last_block), 0)),
                # Targets: whole vector resident in VMEM (single DMA).
                pl.BlockSpec((n_pad, 1), lambda s, i: (0, 0)),
            ],
            out_specs=pl.BlockSpec((1, 8, 128), lambda s, i: (s, 0, 0)),
            scratch_shapes=[
                pltpu.VMEM((tile_n, 1), jnp.float32),   # running loss sum per row
                pltpu.VMEM((tile_n, 1), jnp.float32),   # running valid count per row
            ],
        ),
        compiler_params=pltpu.CompilerParams(
            dimension_semantics=("parallel", "arbitrary"),
            vmem_limit_bytes=32 * 1024 * 1024,
        ),
    )(logits, tgt)

    total = jnp.sum(partials[:, 0, 0])
    count = jnp.sum(partials[:, 0, 1])
    mean = total / count   # NaN if every target == IGNORE_INDEX (matches PyTorch)
    return 5.0 * jnp.arctan(mean) + mean


def _reference(logits, targets):
    """Plain-JAX reference of the PyTorch forward (for sanity check)."""
    logp = jax.nn.log_softmax(logits.astype(jnp.float32), axis=1)
    valid = targets != IGNORE_INDEX
    safe_t = jnp.where(valid, targets, 0).astype(jnp.int32)
    picked = jnp.take_along_axis(logp, safe_t[:, None], axis=1)[:, 0]
    nll = jnp.where(valid, -picked, 0.0)
    mean = jnp.sum(nll) / jnp.sum(valid.astype(jnp.float32))
    return 5.0 * jnp.arctan(mean) + mean


if __name__ == "__main__":
    key = jax.random.PRNGKey(0)
    k1, k2, k3, k4 = jax.random.split(key, 4)

    # Case 1: small f32 problem with an ignore_index row.
    N, C = 16, 32
    logits = jax.random.normal(k1, (N, C), dtype=jnp.float32)
    targets = jax.random.randint(k2, (N,), 0, C, dtype=jnp.int32)
    targets = targets.at[3].set(IGNORE_INDEX)
    out = jax.block_until_ready(cross_entropy_loss_act(logits, targets))
    ref = _reference(logits, targets)
    assert jnp.allclose(out, ref, rtol=1e-5, atol=1e-5), (out, ref)

    # Case 2: batch not a multiple of the tile / split count (exercises padding).
    N2, C2 = 13, 40
    logits2 = jax.random.normal(k3, (N2, C2), dtype=jnp.float32)
    targets2 = jax.random.randint(k4, (N2,), 0, C2, dtype=jnp.int32)
    out2 = jax.block_until_ready(cross_entropy_loss_act(logits2, targets2))
    ref2 = _reference(logits2, targets2)
    assert jnp.allclose(out2, ref2, rtol=1e-5, atol=1e-5), (out2, ref2)

    # Case 3: bf16 logits (kernel upcasts in-register; halves HBM traffic).
    logits_bf16 = logits.astype(jnp.bfloat16)
    out3 = jax.block_until_ready(cross_entropy_loss_act(logits_bf16, targets))
    ref3 = _reference(logits_bf16, targets)
    assert jnp.allclose(out3, ref3, rtol=1e-4, atol=1e-4), (out3, ref3)

    print("KERNEL_OK")
</pallas_src>

<mosaic_0001>
module attributes {stable_mosaic.version = 11 : i64} {
  func.func @_ce_partial_kernel(%arg0: i32, %arg1: i32, %arg2: memref<16x32xf32, #tpu.memory_space<vmem>>, %arg3: memref<32x1xi32, #tpu.memory_space<vmem>>, %arg4: memref<1x8x128xf32, #tpu.memory_space<vmem>>, %arg5: memref<16x1xf32, #tpu.memory_space<vmem>>, %arg6: memref<16x1xf32, #tpu.memory_space<vmem>>) attributes {dimension_semantics = [#tpu.dimension_semantics<parallel>, #tpu.dimension_semantics<arbitrary>], iteration_bounds = array<i64: 2, 1>, scalar_prefetch = 0 : i64, scratch_operands = 2 : i64, tpu.core_type = #tpu.core_type<tc>, window_params = [{transform_indices = @transform_0, window_bounds = array<i64: 16, 32>}, {pipeline_mode = #tpu.pipeline_mode<synchronous>, transform_indices = @transform_1, window_bounds = array<i64: 32, 1>}, {transform_indices = @transform_2, window_bounds = array<i64: 1, 8, 128>}]} {
    %c0_i32 = arith.constant 0 : i32
    %0 = arith.cmpi eq, %arg1, %c0_i32 : i32
    %1 = arith.extui %0 : i1 to i32
    %c0_i32_0 = arith.constant 0 : i32
    %2 = arith.cmpi ne, %1, %c0_i32_0 : i32
    scf.if %2 {
      %cst_17 = arith.constant 0.000000e+00 : f32
      %42 = vector.broadcast %cst_17 : f32 to vector<16x1xf32>
      %c0_18 = arith.constant 0 : index
      %c0_19 = arith.constant 0 : index
      %43 = vector.load %arg5[%c0_18, %c0_19] : memref<16x1xf32, #tpu.memory_space<vmem>>, vector<16x1xf32>
      tpu.vector_store %arg5[%c0_18, %c0_19], %42 {strides = array<i32>} : memref<16x1xf32, #tpu.memory_space<vmem>>, vector<16x1xf32>,
      %cst_20 = arith.constant 0.000000e+00 : f32
      %44 = vector.broadcast %cst_20 : f32 to vector<16x1xf32>
      %c0_21 = arith.constant 0 : index
      %c0_22 = arith.constant 0 : index
      %45 = vector.load %arg6[%c0_21, %c0_22] : memref<16x1xf32, #tpu.memory_space<vmem>>, vector<16x1xf32>
      tpu.vector_store %arg6[%c0_21, %c0_22], %44 {strides = array<i32>} : memref<16x1xf32, #tpu.memory_space<vmem>>, vector<16x1xf32>,
    } else {
    }
    %c0 = arith.constant 0 : index
    %c0_1 = arith.constant 0 : index
    %3 = vector.load %arg2[%c0, %c0_1] : memref<16x32xf32, #tpu.memory_space<vmem>>, vector<16x32xf32>
    %c1_i32 = arith.constant 1 : i32
    %4 = arith.muli %arg0, %c1_i32 : i32
    %5 = arith.addi %4, %arg1 : i32
    %c16_i32 = arith.constant 16 : i32
    %6 = arith.muli %5, %c16_i32 : i32
    %7 = tpu.assume_multiple %6, 16 : i32
    %8 = arith.index_cast %7 : i32 to index
    %c0_2 = arith.constant 0 : index
    %9 = vector.load %arg3[%8, %c0_2] : memref<32x1xi32, #tpu.memory_space<vmem>>, vector<16x1xi32>
    %cst = arith.constant dense<0xFF800000> : vector<16xf32>
    %10 = vector.multi_reduction <maximumf>, %3, %cst [1] : vector<16x32xf32> to vector<16xf32>
    %11 = vector.shape_cast %10 : vector<16xf32> to vector<16x1xf32>
    %12 = vector.broadcast %11 : vector<16x1xf32> to vector<16x32xf32>
    %13 = arith.subf %3, %12 : vector<16x32xf32>
    %14 = math.exp %13 : vector<16x32xf32>
    %cst_3 = arith.constant dense<0.000000e+00> : vector<16xf32>
    %15 = vector.multi_reduction <add>, %14, %cst_3 [1] : vector<16x32xf32> to vector<16xf32>
    %16 = vector.shape_cast %15 : vector<16xf32> to vector<16x1xf32>
    %17 = math.log %16 : vector<16x1xf32>
    %18 = arith.addf %11, %17 : vector<16x1xf32>
    %19 = tpu.iota {dimensions = array<i32: 1>} : vector<16x32xi32>
    %20 = vector.broadcast %9 : vector<16x1xi32> to vector<16x32xi32>
    %21 = arith.cmpi eq, %19, %20 : vector<16x32xi32>
    %cst_4 = arith.constant 0.000000e+00 : f32
    %22 = vector.broadcast %cst_4 : f32 to vector<16x32xf32>
    %23 = arith.select %21, %3, %22 : vector<16x32xi1>, vector<16x32xf32>
    %cst_5 = arith.constant dense<0.000000e+00> : vector<16xf32>
    %24 = vector.multi_reduction <add>, %23, %cst_5 [1] : vector<16x32xf32> to vector<16xf32>
    %25 = vector.shape_cast %24 : vector<16xf32> to vector<16x1xf32>
    %c-100_i32 = arith.constant -100 : i32
    %26 = vector.broadcast %c-100_i32 : i32 to vector<16x1xi32>
    %27 = arith.cmpi ne, %9, %26 : vector<16x1xi32>
    %28 = arith.subf %18, %25 : vector<16x1xf32>
    %cst_6 = arith.constant 0.000000e+00 : f32
    %29 = vector.broadcast %cst_6 : f32 to vector<16x1xf32>
    %30 = arith.select %27, %28, %29 : vector<16x1xi1>, vector<16x1xf32>
    %c0_7 = arith.constant 0 : index
    %c0_8 = arith.constant 0 : index
    %31 = vector.load %arg5[%c0_7, %c0_8] : memref<16x1xf32, #tpu.memory_space<vmem>>, vector<16x1xf32>
    %32 = arith.addf %31, %30 : vector<16x1xf32>
    %c0_9 = arith.constant 0 : index
    %c0_10 = arith.constant 0 : index
    %33 = vector.load %arg5[%c0_9, %c0_10] : memref<16x1xf32, #tpu.memory_space<vmem>>, vector<16x1xf32>
    tpu.vector_store %arg5[%c0_9, %c0_10], %32 {strides = array<i32>} : memref<16x1xf32, #tpu.memory_space<vmem>>, vector<16x1xf32>,
    %c0_11 = arith.constant 0 : index
    %c0_12 = arith.constant 0 : index
    %34 = vector.load %arg6[%c0_11, %c0_12] : memref<16x1xf32, #tpu.memory_space<vmem>>, vector<16x1xf32>
    %35 = arith.extui %27 : vector<16x1xi1> to vector<16x1xi32>
    %36 = arith.sitofp %35 : vector<16x1xi32> to vector<16x1xf32>
    %37 = arith.addf %34, %36 : vector<16x1xf32>
    %c0_13 = arith.constant 0 : index
    %c0_14 = arith.constant 0 : index
    %38 = vector.load %arg6[%c0_13, %c0_14] : memref<16x1xf32, #tpu.memory_space<vmem>>, vector<16x1xf32>
    tpu.vector_store %arg6[%c0_13, %c0_14], %37 {strides = array<i32>} : memref<16x1xf32, #tpu.memory_space<vmem>>, vector<16x1xf32>,
    %c0_i32_15 = arith.constant 0 : i32
    %39 = arith.cmpi eq, %arg1, %c0_i32_15 : i32
    %40 = arith.extui %39 : i1 to i32
    %c0_i32_16 = arith.constant 0 : i32
    %41 = arith.cmpi ne, %40, %c0_i32_16 : i32
    scf.if %41 {
      %c0_17 = arith.constant 0 : index
      %c0_18 = arith.constant 0 : index
      %42 = vector.load %arg5[%c0_17, %c0_18] : memref<16x1xf32, #tpu.memory_space<vmem>>, vector<16x1xf32>
      %43 = vector.shape_cast %42 : vector<16x1xf32> to vector<1x16x1xf32>
      %cst_19 = arith.constant dense<0.000000e+00> : vector<1xf32>
      %44 = vector.multi_reduction <add>, %43, %cst_19 [1, 2] : vector<1x16x1xf32> to vector<1xf32>
      %45 = vector.shape_cast %44 : vector<1xf32> to vector<1x1x1xf32>
      %46 = vector.extract %45[0, 0, 0] : f32 from vector<1x1x1xf32>
      %c0_20 = arith.constant 0 : index
      %c0_21 = arith.constant 0 : index
      %47 = vector.load %arg6[%c0_20, %c0_21] : memref<16x1xf32, #tpu.memory_space<vmem>>, vector<16x1xf32>
      %48 = vector.shape_cast %47 : vector<16x1xf32> to vector<1x16x1xf32>
      %cst_22 = arith.constant dense<0.000000e+00> : vector<1xf32>
      %49 = vector.multi_reduction <add>, %48, %cst_22 [1, 2] : vector<1x16x1xf32> to vector<1xf32>
      %50 = vector.shape_cast %49 : vector<1xf32> to vector<1x1x1xf32>
      %51 = vector.extract %50[0, 0, 0] : f32 from vector<1x1x1xf32>
      %52 = tpu.iota {dimensions = array<i32: 1>} : vector<1x8x128xi32>
      %53 = tpu.iota {dimensions = array<i32: 2>} : vector<1x8x128xi32>
      %c0_i32_23 = arith.constant 0 : i32
      %54 = vector.broadcast %c0_i32_23 : i32 to vector<1x8x128xi32>
      %55 = arith.cmpi eq, %52, %54 : vector<1x8x128xi32>
      %c0_i32_24 = arith.constant 0 : i32
      %56 = vector.broadcast %c0_i32_24 : i32 to vector<1x8x128xi32>
      %57 = arith.cmpi eq, %53, %56 : vector<1x8x128xi32>
      %58 = arith.andi %55, %57 : vector<1x8x128xi1>
      %c0_i32_25 = arith.constant 0 : i32
      %59 = vector.broadcast %c0_i32_25 : i32 to vector<1x8x128xi32>
      %60 = arith.cmpi eq, %52, %59 : vector<1x8x128xi32>
      %c1_i32_26 = arith.constant 1 : i32
      %61 = vector.broadcast %c1_i32_26 : i32 to vector<1x8x128xi32>
      %62 = arith.cmpi eq, %53, %61 : vector<1x8x128xi32>
      %63 = arith.andi %60, %62 : vector<1x8x128xi1>
      %cst_27 = arith.constant 0.000000e+00 : f32
      %64 = vector.broadcast %51 : f32 to vector<1x8x128xf32>
      %65 = vector.broadcast %cst_27 : f32 to vector<1x8x128xf32>
      %66 = arith.select %63, %64, %65 : vector<1x8x128xi1>, vector<1x8x128xf32>
      %67 = vector.broadcast %46 : f32 to vector<1x8x128xf32>
      %68 = arith.select %58, %67, %66 : vector<1x8x128xi1>, vector<1x8x128xf32>
      %c0_28 = arith.constant 0 : index
      %c0_29 = arith.constant 0 : index
      %c0_30 = arith.constant 0 : index
      %69 = vector.load %arg4[%c0_28, %c0_29, %c0_30] : memref<1x8x128xf32, #tpu.memory_space<vmem>>, vector<1x8x128xf32>
      tpu.vector_store %arg4[%c0_28, %c0_29, %c0_30], %68 {strides = array<i32>} : memref<1x8x128xf32, #tpu.memory_space<vmem>>, vector<1x8x128xf32>,
    } else {
    }
    return
  }
  func.func @transform_0(%arg0: i32, %arg1: i32) -> (i32, i32) {
    %c1_i32 = arith.constant 1 : i32
    %0 = arith.muli %arg0, %c1_i32 : i32
    %1 = arith.addi %0, %arg1 : i32
    %c0_i32 = arith.constant 0 : i32
    %2 = arith.minsi %1, %c0_i32 : i32
    %c0_i32_0 = arith.constant 0 : i32
    %c0_i32_1 = arith.constant 0 : i32
    return %2, %c0_i32_0 : i32, i32
  }
  func.func @transform_1(%arg0: i32, %arg1: i32) -> (i32, i32) {
    %c0_i32 = arith.constant 0 : i32
    %c0_i32_0 = arith.constant 0 : i32
    %c0_i32_1 = arith.constant 0 : i32
    return %c0_i32, %c0_i32_0 : i32, i32
  }
  func.func @transform_2(%arg0: i32, %arg1: i32) -> (i32, i32, i32) {
    %c0_i32 = arith.constant 0 : i32
    %c0_i32_0 = arith.constant 0 : i32
    %c0_i32_1 = arith.constant 0 : i32
    return %arg0, %c0_i32, %c0_i32_0 : i32, i32, i32
  }
}

</mosaic_0001>

<bundles_post_ra>
// kernel: tpu_custom_call.1
= control target key start
LH: loop header
LB: loop body
LE: loop exit
PB: predicated region body
PF: predicated region fallthrough
CT: control target
= control target key end

     0   :  { %7 = vsyncpa [#allocation5], 0  ;;  %s728_s0 = inlined_call_operand.vmem [shape: f32[16,32], index: 0, kind: input, shape index: {}]   ;;  %s729_s1 = inlined_call_operand.vmem [shape: s32[32,1], index: 1, kind: input, shape index: {}]   ;;  %s730_s2 = inlined_call_operand.hbm [shape: f32[2,8,128], index: 2, kind: output, shape index: {}]  }
   0x1   :  { %9 = vsyncpa [#allocation5 + $0x1], 0  ;;  %s570_s9 = smov 0   ;;  %s572_s10 = smov 0  }
   0x2   :  { %s574_s11 = smov 0   ;;  %s576_s12 = smov 0  }
   0x3   :  { %s578_s13 = smov 0   ;;  %s580_s14 = smov 0  }
   0x4 LB: > { %s386_s15 = sadd.s32 4294967295, %s550_s14   ;;  %s387_s16 = sadd.s32 4294967294, %s550_s14   ;;  %s550_s14 = sphi %s580_s14, %s15_s14   ;;  %s546_s13 = sphi %s578_s13, %s737_s13   ;;  %s542_s12 = sphi %s576_s12, %s736_s12   ;;  %s538_s11 = sphi %s574_s11, %s735_s11   ;;  %s534_s10 = sphi %s572_s10, %s734_s10   ;;  %s530_s9 = sphi %s570_s9, %s733_s9  }
   0x5   : > { %s27_s17 = sadd.s32 1, %s546_s13  ;;  %s87_s18 = sadd.s32 1, %s538_s11 }
   0x6   : > { %p29_p0 = scmp.ge.s32.totalorder %s27_s17, 2  ;;  %p97_p1 = scmp.ne.s32.totalorder %s538_s11, %s534_s10 }
   0x7   : > { %p98_p2 = scmp.eq.s32.totalorder %s386_s15, 1  ;;  %p103_p3 = scmp.ne.s32.totalorder %s534_s10, %s530_s9 }
   0x8   : > { %s739_s17 = smov (%p29_p0, %s27_s17), 0  ;;  %p104_p5 = scmp.eq.s32.totalorder %s387_s16, 1 }
   0x9   : > { %p610_p4 = por %p98_p2, %p97_p1  ;;  %s84_s20 = ssub.s32 %s546_s13, %s739_s17 }
   0xa   : > { %p390_p6 = scmp.ge.s32.totalorder %s550_s14, 1  ;;  %p85_p7 = scmp.eq.s32.totalorder %s84_s20, 0 }
   0xb   : > { %p617_p8 = por %p104_p5, %p103_p3  ;;  %p140_p9 = scmp.lt.s32.totalorder %s550_s14, 3 }
   0xc   : > { %s623_s22 = scalar_select %p85_p7, %s538_s11, %s87_s18  }
   0xd   : > { %p141_p10 = pnand %p390_p6, %p140_p9 }
   0xe   : > { %p166_p11 = scmp.lt.s32.totalorder (!%p141_p10), %s542_s12, 0  ;;  %s394_s23 = sshll.u32 (!%p141_p10), %s542_s12, 4  ;;  %vm181_vm0 = vcmask (!%p141_p10), 7168   ;;  %v552_v0 = vmov (!%p141_p10), 0   ;;  %v553_v1 = vmov (!%p141_p10), 0.0   ;;  %vm193_vm3 = vcmask (!%p141_p10), 261120  }
   0xf   : > { %144 = sbr.rel (%p141_p10) target bundleno = 592 (0x250), region = 28  ;;  %462 = vset.pattern.permute.xlu1 (!%p141_p10), %v552_v0  ;;  %s190_s26 = scalar_lea.vmem (!%p141_p10), %s729_s1, %s394_s23  ;;  %184 = vst.msk [vmem:[#allocation3] sm:$0xff] (!%p141_p10), %vm181_vm0, %v553_v1  ;;  %182 = vst.msk [vmem:[#allocation2] sm:$0xff] (!%p141_p10), %vm181_vm0, %v553_v1  ;;  %463 = vset.pattern.permute.xlu0 (!%p141_p10), %v552_v0  ;;  %v218_v18 = vlaneseq (!%p141_p10) }
  0x10   : > { %183 = vst.msk [vmem:[#allocation2 + $0x8] sm:$0xff] (!%p141_p10), %vm181_vm0, %v553_v1  ;;  %185 = vst.msk [vmem:[#allocation3 + $0x8] sm:$0xff] (!%p141_p10), %vm181_vm0, %v553_v1  ;;  %v635_v2 = vld [vmem:[%s190_s26] sm:$0xff] (!%p141_p10)  ;;  %v638_v3 = vld [vmem:[%s190_s26 + $0x8] sm:$0xff] (!%p141_p10)  ;;  %s162_s5 = sand.u32 (!%p141_p10), 1, %s534_s10   ;;  %s398_s7 = sshll.u32 (!%p141_p10), %s542_s12, 7 }
  0x11   : > { %221 = vperm.xlu1 (!%p141_p10), %462, %v635_v2   ;;  %vm236_vm1 = vcmp.ne.s32.totalorder (!%p141_p10), %v635_v2, 4294967196  ;;  %vm237_vm2 = vcmp.ne.s32.totalorder (!%p141_p10), %v638_v3, 4294967196  ;;  %v655_v22 = vand.u32 (!%p141_p10), 127, %v218_v18  ;;  %s391_s6 = sshll.u32 (!%p141_p10), %s162_s5, 3  ;;  %s681_s24 = scalar_lea.hbm (!%p141_p10), %s730_s2, %s398_s7 }
  0x12   : > { %v395_v4 = vsel (!%p141_p10), %vm236_vm1, 1.0, %v553_v1  ;;  %v396_v5 = vsel (!%p141_p10), %vm237_vm2, 1.0, %v553_v1  ;;  %s164_s15 = scalar_lea.vmem (!%p141_p10), [#allocation4], %s391_s6  ;;  %s554_s26 = smov (!%p141_p10), [#allocation4]  }
  0x13   : > { %vm295_vm7 = vcmp.eq.s32.totalorder (!%p141_p10), %v655_v22, 1  ;;  %vm293_vm8 = vcmp.eq.s32.totalorder (!%p141_p10), %v655_v22, 0  ;;  %s316_s16 = sshll.u32 (!%p141_p10), %s164_s15, 4  ;;  %s683_s16 = int_to_ptr.vmem [resolvable:$true] %s316_s16 }
  0x14   : > { %s472_s25 = scalar_lea.vmem (!%p141_p10), %s683_s16, 128 }
  0x15   : > { %224 = vperm.xlu1 (!%p141_p10), %462, %v638_v3   ;;  %p473_p13 = scmp.ne.s32.totalorder (!%p141_p10), %s683_s16, %s472_s25 }
  0x16   : > { %s167_s27 = scalar_select %p166_p11, %s542_s12, 0  ;;  %v249_v6 = vld [vmem:[#allocation3] sm:$0xff]  ;;  %v242_v40 = vld [vmem:[#allocation2] sm:$0xff] }
  0x17   : > { %v250_v7 = vld [vmem:[#allocation3 + $0x8] sm:$0xff]  ;;  %v255_v8 = vadd.f32 %v395_v4, %v249_v6  ;;  %v243_v46 = vld [vmem:[#allocation2 + $0x8] sm:$0xff]  ;;  %s303_s12 = scalar_lea.sflag [#allocation5], %s162_s5  ;;  %p474_p0 = pnand %p473_p13, %p610_p4 }
  0x18   : > { %s392_s28 = sshll.u32 %s167_s27, 1  ;;  %v256_v9 = vadd.f32 %v396_v5, %v250_v7  ;;  %s476_s27 = sshll.u32 %s554_s26, 4  ;;  %s477_s27 = int_to_ptr.vmem [resolvable:$false] %s476_s27 }
  0x19   : > { %p169_p12 = scmp.lt.s32.totalorder %s392_s28, 1  ;;  %257 = vst.msk [vmem:[#allocation3] sm:$0xff] %vm181_vm0, %v255_v8  ;;  %p475_p1 = pneg %p474_p0 }
  0x1a   : > { %258 = vst.msk [vmem:[#allocation3 + $0x8] sm:$0xff] %vm181_vm0, %v256_v9  ;;  %p479_p2 = scmp.lt.s32.totalorder %s683_s16, %s477_s27 }
  0x1b   : > { %s741_s28 = smov (!%p169_p12, %s392_s28), 1 }
  0x1c   : > { %s393_s29 = sshll.u32 %s741_s28, 3  ;;  %s478_s28 = scalar_lea.vmem %s477_s27, 256 }
  0x1d   : > { %s172_s4 = scalar_lea.vmem %s728_s0, %s393_s29  ;;  %p480_p3 = scmp.lt.s32.totalorder %s478_s28, %s472_s25 }
  0x1e   : > { %v186_v10 = vld [vmem:[%s172_s4] sm:$0xff]  ;;  %v187_v11 = vld [vmem:[%s172_s4 + $0x8] sm:$0xff] }
  0x1f   : > { %v194_v12 = vsel %vm193_vm3, %v186_v10, -inf  ;;  %v197_v13 = vsel %vm193_vm3, %v187_v11, -inf  ;;  %p481_p5 = por %p480_p3, %p479_p2 }
  0x20   : > { %195 = vmax.xlane.f32.xlu0 %v194_v12  ;;  %v276_v51 = vld [vmem:[#allocation3] sm:$0xff] }
  0x21   : > { %v277_v52 = vld [vmem:[#allocation3 + $0x8] sm:$0xff]  ;;  %v278_v56 = vsel %vm181_vm0, %v276_v51, 0.0  ;;  %p482_p6 = pnand %p481_p5, %p475_p1 }
  0x22   : > { %v279_v57 = vsel %vm181_vm0, %v277_v52, 0.0 }
  0x23   : > { %v280_v59 = vadd.f32 %v279_v57, %v278_v56 }
  0x24   : > { %198 = vmax.xlane.f32.xlu0 %v197_v13 }
  0x90   : > { %v222_v21 = vpop.permute.xlu1 %221 }
  0x91   : > { %vm226_vm4 = vcmp.eq.s32.totalorder %v655_v22, %v222_v21 }
  0x92   : > { %v228_v25 = vsel %vm226_vm4, %v186_v10, 0.0 }
  0x93   : > { %v230_v27 = vsel %vm193_vm3, %v228_v25, 0.0 }
  0x94   : > { %v225_v23 = vpop.permute.xlu1 %224 }
  0x95   : > { %vm227_vm5 = vcmp.eq.s32.totalorder %v655_v22, %v225_v23 }
  0x96   : > { %v229_v29 = vsel %vm227_vm5, %v187_v11, 0.0 }
  0x97   : > { %v233_v31 = vsel %vm193_vm3, %v229_v29, 0.0 }
  0xad   : > { %v196_v14 = vpop.xlane.xlu0 %195 }
  0xae   : > { %v200_v15 = vsub.f32 %v186_v10, %v196_v14  ;;  %v291_v10 = vshrl.u32 %v218_v18, 7 }
  0xb0   : > { %v202_v16 = vmul.f32 1.442695, %v200_v15  ;;  %vm292_vm6 = vcmp.eq.s32.totalorder %v291_v10, 0 }
  0xb1   : > { %v199_v17 = vpop.xlane.xlu0 %198  ;;  %vm296_vm9 = vmand %vm292_vm6, %vm295_vm7 }
  0xb2   : > { %464 = vpow2.f32 %v202_v16  ;;  %v201_v19 = vsub.f32 %v187_v11, %v199_v17  ;;  %vm294_vm10 = vmand %vm292_vm6, %vm293_vm8 }
  0xb4   : > { %v204_v20 = vmul.f32 1.442695, %v201_v19 }
  0xb6   : > { %466 = vpow2.f32 %v204_v20 }
  0xbc   : > { %v465_v24 = vpop.eup %464 }
  0xbd   : > { %v206_v26 = vsel %vm193_vm3, %v465_v24, 0.0 }
  0xbe   : > { %207 = vadd.xlane.f32.xlu0 %v206_v26 }
  0xc0   : > { %v467_v28 = vpop.eup %466 }
  0xc1   : > { %v209_v30 = vsel %vm193_vm3, %v467_v28, 0.0 }
  0xc2   : > { %210 = vadd.xlane.f32.xlu1 %v209_v30  ;;  %231 = vadd.xlane.f32.xlu0 %v230_v27 }
  0xc6   : > { %234 = vadd.xlane.f32.xlu0 %v233_v31 }
 0x14b   : > { %v208_v32 = vpop.xlane.xlu0 %207 }
 0x14c   : > { %468 = vlog2.f32 %v208_v32 }
 0x14f   : > { %v211_v33 = vpop.xlane.xlu1 %210  ;;  %v232_v36 = vpop.xlane.xlu0 %231 }
 0x150   : > { %470 = vlog2.f32 %v211_v33 }
 0x153   : > { %v235_v45 = vpop.xlane.xlu0 %234 }
 0x156   : > { %v469_v34 = vpop.eup %468 }
 0x157   : > { %v213_v35 = vmul.f32 0.6931472, %v469_v34 }
 0x159   : > { %v216_v37 = vadd.f32 %v213_v35, %v196_v14 }
 0x15a   : > { %v471_v38 = vpop.eup %470 }
 0x15b   : > { %v215_v39 = vmul.f32 0.6931472, %v471_v38  ;;  %v238_v41 = vsub.f32 %v216_v37, %v232_v36 }
 0x15d   : > { %v240_v42 = vsel %vm236_vm1, %v238_v41, 0.0  ;;  %v217_v43 = vadd.f32 %v215_v39, %v199_v17 }
 0x15e   : > { %v244_v44 = vadd.f32 %v242_v40, %v240_v42 }
 0x15f   : > { %v239_v47 = vsub.f32 %v217_v43, %v235_v45 }
 0x160   : > { %247 = vst.msk [vmem:[#allocation2] sm:$0xff] %vm181_vm0, %v244_v44 }
 0x161   : > { %v241_v48 = vsel %vm237_vm2, %v239_v47, 0.0 }
 0x162   : > { %v245_v49 = vadd.f32 %v243_v46, %v241_v48 }
 0x164   : > { %248 = vst.msk [vmem:[#allocation2 + $0x8] sm:$0xff] %vm181_vm0, %v245_v49 }
 0x167   : > { %v262_v50 = vld [vmem:[#allocation2] sm:$0xff] }
 0x168   : > { %v264_v54 = vsel %vm181_vm0, %v262_v50, 0.0 }
 0x16b   : > { %v263_v53 = vld [vmem:[#allocation2 + $0x8] sm:$0xff] }
 0x16c   : > { %v265_v55 = vsel %vm181_vm0, %v263_v53, 0.0 }
 0x16d   : > { %v266_v58 = vadd.f32 %v265_v55, %v264_v54 }
 0x16f   : > { %267 = vadd.xlane.f32.xlu0 %v266_v58 }
 0x173   : > { %281 = vadd.xlane.f32.xlu0 %v280_v59 }
 0x1fc   : > { %v268_v60 = vpop.xlane.xlu0 %267 }
 0x1fd   : > { %v269_v61 = vrot.slane %v268_v60, 4 }
 0x1ff   : > { %v270_v62 = vadd.f32 %v269_v61, %v268_v60 }
 0x200   : > { %v282_v63 = vpop.xlane.xlu0 %281 }
 0x201   : > { %v271_v0 = vrot.slane %v270_v62, 2  ;;  %v283_v1 = vrot.slane %v282_v63, 4 }
 0x203   : > { %v284_v2 = vadd.f32 %v283_v1, %v282_v63  ;;  %v272_v3 = vadd.f32 %v271_v0, %v270_v62 }
 0x205   : > { %v285_v4 = vrot.slane %v284_v2, 2  ;;  %v273_v5 = vrot.slane %v272_v3, 1 }
 0x207   : > { %v286_v6 = vadd.f32 %v285_v4, %v284_v2  ;;  %v274_v7 = vadd.f32 %v273_v5, %v272_v3 }
 0x209   : > { %401 = vpush %v274_v7  ;;  %v287_v8 = vrot.slane %v286_v6, 1 }
 0x20b   : > { %v288_v9 = vadd.f32 %v287_v8, %v286_v6 }
 0x20d   : > { %403 = vpush %v288_v9 }
 0x23a   : > { %s402_s8 = spop %401 }
 0x23b   : > { %v299_v12 = vstv %s402_s8 }
 0x23e   : > { %s404_s18 = spop %403 }
 0x23f   : > { %v297_v11 = vstv %s404_s18 }
 0x240   : > { %v298_v13 = vsel %vm296_vm9, %v297_v11, 0.0 }
 0x241   : > { %v300_v14 = vsel %vm294_vm10, %v299_v12, %v298_v13 }
 0x242   : > { %301 = vst [vmem:[%s164_s15] sm:$0xff] %v300_v14 }
 0x243   : > { %485 = shalt.err (!%p482_p6)
}
 0x244   : > { %s486_s29 = scalar_lea.hbm %s681_s24, 128  ;;  %s490_s4 = scalar_lea.hbm %s730_s2, 256 }
 0x245   : > { %p487_p7 = scmp.ne.s32.totalorder %s681_s24, %s486_s29  ;;  %p491_p11 = scmp.lt.u32.totalorder %s681_s24, %s730_s2 }
 0x246   : > { %p492_p12 = scmp.lt.u32.totalorder %s490_s4, %s486_s29  ;;  %p494_p0 = scmp.lt.u32.totalorder %s486_s29, %s681_s24 }
 0x247   : > { %p488_p9 = pnand %p487_p7, %p610_p4 }
 0x248   : > { %p493_p13 = por %p492_p12, %p491_p11 }
 0x249   : > { %p489_p10 = pneg %p488_p9 }
 0x24a   : > { %p495_p1 = por %p494_p0, %p493_p13 }
 0x24c   : > { %p496_p2 = pnand %p495_p1, %p489_p10 }
 0x24e   : > { %499 = shalt.err (!%p496_p2)
}
 0x24f   : > { %405 = dma.vmem_to_hbm [thread:$0]  (%p610_p4), %s683_s16, 128, %s681_s24, %s303_s12  }
 0x250 PF: > { %p411_p3 = scmp.ge.s32.totalorder %s550_s14, 2  ;;  %s328_s7 = sand.u32 1, %s530_s9  }
 0x251   : > { %s329_s8 = scalar_lea.sflag [#allocation5], %s328_s7 }
 0x252   : > { %p408_p5 = pnand %p411_p3, %p617_p8 }
 0x254   : > { %525 = dma.done.wait (!%p408_p5), %s329_s8, 128  }
 0x255   : > { %527 = vsyncadd (!%p408_p5), %s329_s8, 4294967168  ;;  %s15_s14 = sadd.s32 1, %s550_s14   ;;  %s733_s9 = smov %s534_s10 }
 0x256   : > { %p12_p6 = scmp.ge.s32.totalorder %s15_s14, 4   ;;  %s734_s10 = smov %s538_s11 }
 0x257   : > { %s735_s11 = smov %s623_s22  ;;  %s736_s12 = smov %s546_s13 }
 0x258   : > { %s737_s13 = smov %s739_s17  ;;  %14 = sbr.rel (!%p12_p6) target bundleno = 4 (0x4), region = 72 }
 0x25f   :  { %334 = vsyncpa [#allocation5], 1 }
 0x260   :  { %336 = vsyncpa [#allocation5 + $0x1], 1 }

</bundles_post_ra>
